<compile_context>
chip_gen: v7x
topology: tpu7x:2x2x1
jax: 0.10.0
libtpu: 0.0.40
codegen_flags: <defaults>
</compile_context>

<pallas_src>
import jax
import jax.numpy as jnp
from jax.experimental import pallas as pl
from jax.experimental.pallas import tpu as pltpu

DIMENSION = 3  # tic-tac-toe board dimension -> input features = 9
IN_DIM = DIMENSION * DIMENSION
H1 = 256
H2 = 128
OUT_DIM = 1


def _value_net_kernel(x_ref, w1_ref, b1_ref, w2_ref, b2_ref, w3_ref, b3_ref,
                      o_ref):
    # x_ref: (IN_DIM, TB) batch-on-lanes tile of the input.
    x = x_ref[...]
    # Layer 1: (256, 9) @ (9, TB) + (256, 1) -> ReLU
    h1 = jnp.dot(w1_ref[...], x, preferred_element_type=jnp.float32)
    h1 = jnp.maximum(h1 + b1_ref[...], 0.0)
    # Layer 2: (128, 256) @ (256, TB) + (128, 1) -> ReLU
    h2 = jnp.dot(w2_ref[...], h1, preferred_element_type=jnp.float32)
    h2 = jnp.maximum(h2 + b2_ref[...], 0.0)
    # Layer 3: (1, 128) @ (128, TB) + (1, 1) -> tanh  (lane-dense (1, TB) store)
    v = jnp.dot(w3_ref[...], h2, preferred_element_type=jnp.float32)
    o_ref[...] = jnp.tanh(v + b3_ref[...]).astype(o_ref.dtype)


def value_net_forward_t(x_t, params, *, block_batch=256):
    """Batch-on-lanes entry point.

    x_t: (IN_DIM, B) float32 (batch on the lane axis).
    params: PyTorch-native layouts: w* is (out, in), b* is (out, 1).
    Returns (1, B) float32 values in [-1, 1].
    """
    in_dim, B = x_t.shape
    assert in_dim == IN_DIM

    # Lane-align the batch and pick a batch tile that is a multiple of 128.
    B_pad = ((B + 127) // 128) * 128
    TB = max(128, min(block_batch, B_pad))
    B_pad = ((B_pad + TB - 1) // TB) * TB
    if B_pad != B:
        x_t = jnp.pad(x_t, ((0, 0), (0, B_pad - B)))

    w1, b1 = params["w1"], params["b1"]
    w2, b2 = params["w2"], params["b2"]
    w3, b3 = params["w3"], params["b3"]

    num_blocks = pl.cdiv(B_pad, TB)

    out = pl.pallas_call(
        _value_net_kernel,
        out_shape=jax.ShapeDtypeStruct((OUT_DIM, B_pad), jnp.float32),
        grid=(num_blocks,),
        in_specs=[
            # Input tile walks the batch (lane) axis.
            pl.BlockSpec((IN_DIM, TB), lambda i: (0, i)),
            # Weights / biases: constant block index -> resident in VMEM.
            pl.BlockSpec((H1, IN_DIM), lambda i: (0, 0)),
            pl.BlockSpec((H1, 1), lambda i: (0, 0)),
            pl.BlockSpec((H2, H1), lambda i: (0, 0)),
            pl.BlockSpec((H2, 1), lambda i: (0, 0)),
            pl.BlockSpec((OUT_DIM, H2), lambda i: (0, 0)),
            pl.BlockSpec((OUT_DIM, 1), lambda i: (0, 0)),
        ],
        # Lane-dense output tile (last dim TB is a multiple of 128).
        out_specs=pl.BlockSpec((OUT_DIM, TB), lambda i: (0, i)),
        compiler_params=pltpu.CompilerParams(
            dimension_semantics=("parallel",),
            vmem_limit_bytes=16 * 1024 * 1024,
        ),
    )(x_t, w1, b1, w2, b2, w3, b3)

    return out[:, :B]


def value_net_forward(x, params, *, block_batch=256):
    """PyTorch-compatible shim: x is (B, 9), returns (B, 1).

    The transpose to the batch-on-lanes layout happens once in the XLA
    wrapper; callers that can produce (9, B) directly should use
    value_net_forward_t to avoid it.
    """
    out_t = value_net_forward_t(x.T, params, block_batch=block_batch)
    return out_t.T


def init_params(key):
    """Deterministic synthetic init matching torch.nn.Linear defaults.

    Weights are stored in PyTorch-native (out, in) layout; biases as (out, 1).
    Uniform(-1/sqrt(fan_in), 1/sqrt(fan_in)).
    """
    keys = jax.random.split(key, 6)

    def uni(k, shape, fan_in):
        bound = 1.0 / jnp.sqrt(jnp.float32(fan_in))
        return jax.random.uniform(k, shape, jnp.float32, -bound, bound)

    return {
        "w1": uni(keys[0], (H1, IN_DIM), IN_DIM),
        "b1": uni(keys[1], (H1, 1), IN_DIM),
        "w2": uni(keys[2], (H2, H1), H1),
        "b2": uni(keys[3], (H2, 1), H1),
        "w3": uni(keys[4], (OUT_DIM, H2), H2),
        "b3": uni(keys[5], (OUT_DIM, 1), H2),
    }


def _reference_forward(x, params):
    """Pure-JAX reference with PyTorch semantics: x @ W.T + b."""
    h1 = jnp.maximum(x @ params["w1"].T + params["b1"].T, 0.0)
    h2 = jnp.maximum(h1 @ params["w2"].T + params["b2"].T, 0.0)
    return jnp.tanh(h2 @ params["w3"].T + params["b3"].T)


if __name__ == "__main__":
    key = jax.random.PRNGKey(0)
    pkey, xkey = jax.random.split(key)
    params = init_params(pkey)

    # Batch many board evaluations per call (MCTS leaf batching); 512 boards
    # with a 128-wide batch tile exercises a 4-step pipelined grid.
    batch = 512
    # Tic-tac-toe board encodings in {-1, 0, 1}, flattened to (B, 9).
    x = jax.random.randint(xkey, (batch, IN_DIM), -1, 2).astype(jnp.float32)

    out = value_net_forward(x, params, block_batch=128)
    out = jax.block_until_ready(out)

    ref = _reference_forward(x, params)
    assert out.shape == (batch, OUT_DIM)
    assert jnp.allclose(out, ref, atol=1e-4, rtol=1e-4)

    print("KERNEL_OK")
</pallas_src>

<mosaic_0001>
module attributes {stable_mosaic.version = 11 : i64} {
  func.func @_value_net_kernel(%arg0: i32, %arg1: memref<9x128xf32, #tpu.memory_space<vmem>>, %arg2: memref<256x9xf32, #tpu.memory_space<vmem>>, %arg3: memref<256x1xf32, #tpu.memory_space<vmem>>, %arg4: memref<128x256xf32, #tpu.memory_space<vmem>>, %arg5: memref<128x1xf32, #tpu.memory_space<vmem>>, %arg6: memref<1x128xf32, #tpu.memory_space<vmem>>, %arg7: memref<1x1xf32, #tpu.memory_space<vmem>>, %arg8: memref<1x128xf32, #tpu.memory_space<vmem>>) attributes {dimension_semantics = [#tpu.dimension_semantics<parallel>], iteration_bounds = array<i64: 4>, scalar_prefetch = 0 : i64, scratch_operands = 0 : i64, tpu.core_type = #tpu.core_type<tc>, window_params = [{transform_indices = @transform_0, window_bounds = array<i64: 9, 128>}, {pipeline_mode = #tpu.pipeline_mode<synchronous>, transform_indices = @transform_1, window_bounds = array<i64: 256, 9>}, {pipeline_mode = #tpu.pipeline_mode<synchronous>, transform_indices = @transform_2, window_bounds = array<i64: 256, 1>}, {pipeline_mode = #tpu.pipeline_mode<synchronous>, transform_indices = @transform_3, window_bounds = array<i64: 128, 256>}, {pipeline_mode = #tpu.pipeline_mode<synchronous>, transform_indices = @transform_4, window_bounds = array<i64: 128, 1>}, {pipeline_mode = #tpu.pipeline_mode<synchronous>, transform_indices = @transform_5, window_bounds = array<i64: 1, 128>}, {pipeline_mode = #tpu.pipeline_mode<synchronous>, transform_indices = @transform_6, window_bounds = array<i64: 1, 1>}, {transform_indices = @transform_7, window_bounds = array<i64: 1, 128>}]} {
    %c0 = arith.constant 0 : index
    %c0_0 = arith.constant 0 : index
    %0 = vector.load %arg1[%c0, %c0_0] : memref<9x128xf32, #tpu.memory_space<vmem>>, vector<9x128xf32>
    %c0_1 = arith.constant 0 : index
    %c0_2 = arith.constant 0 : index
    %1 = vector.load %arg2[%c0_1, %c0_2] : memref<256x9xf32, #tpu.memory_space<vmem>>, vector<256x9xf32>
    %cst = arith.constant dense<0.000000e+00> : vector<256x128xf32>
    %2 = tpu.matmul %1, %0, %cst {dimension_numbers = #tpu.dot_dimension_numbers<[1], [0], [0], [1], [0, 0, 1, 1], [], []>} : vector<256x9xf32>, vector<9x128xf32>, vector<256x128xf32> -> vector<256x128xf32>
    %c0_3 = arith.constant 0 : index
    %c0_4 = arith.constant 0 : index
    %3 = vector.load %arg3[%c0_3, %c0_4] : memref<256x1xf32, #tpu.memory_space<vmem>>, vector<256x1xf32>
    %4 = vector.broadcast %3 : vector<256x1xf32> to vector<256x128xf32>
    %5 = arith.addf %2, %4 : vector<256x128xf32>
    %cst_5 = arith.constant 0.000000e+00 : f32
    %6 = vector.broadcast %cst_5 : f32 to vector<256x128xf32>
    %7 = arith.maximumf %5, %6 : vector<256x128xf32>
    %c0_6 = arith.constant 0 : index
    %c0_7 = arith.constant 0 : index
    %8 = vector.load %arg4[%c0_6, %c0_7] : memref<128x256xf32, #tpu.memory_space<vmem>>, vector<128x256xf32>
    %cst_8 = arith.constant dense<0.000000e+00> : vector<128x128xf32>
    %9 = tpu.matmul %8, %7, %cst_8 {dimension_numbers = #tpu.dot_dimension_numbers<[1], [0], [0], [1], [0, 0, 1, 1], [], []>} : vector<128x256xf32>, vector<256x128xf32>, vector<128x128xf32> -> vector<128x128xf32>
    %c0_9 = arith.constant 0 : index
    %c0_10 = arith.constant 0 : index
    %10 = vector.load %arg5[%c0_9, %c0_10] : memref<128x1xf32, #tpu.memory_space<vmem>>, vector<128x1xf32>
    %11 = vector.broadcast %10 : vector<128x1xf32> to vector<128x128xf32>
    %12 = arith.addf %9, %11 : vector<128x128xf32>
    %cst_11 = arith.constant 0.000000e+00 : f32
    %13 = vector.broadcast %cst_11 : f32 to vector<128x128xf32>
    %14 = arith.maximumf %12, %13 : vector<128x128xf32>
    %c0_12 = arith.constant 0 : index
    %c0_13 = arith.constant 0 : index
    %15 = vector.load %arg6[%c0_12, %c0_13] : memref<1x128xf32, #tpu.memory_space<vmem>>, vector<1x128xf32>
    %cst_14 = arith.constant dense<0.000000e+00> : vector<1x128xf32>
    %16 = tpu.matmul %15, %14, %cst_14 {dimension_numbers = #tpu.dot_dimension_numbers<[1], [0], [0], [1], [0, 0, 1, 1], [], []>} : vector<1x128xf32>, vector<128x128xf32>, vector<1x128xf32> -> vector<1x128xf32>
    %c0_15 = arith.constant 0 : index
    %c0_16 = arith.constant 0 : index
    %17 = vector.load %arg7[%c0_15, %c0_16] : memref<1x1xf32, #tpu.memory_space<vmem>>, vector<1x1xf32>
    %18 = vector.broadcast %17 : vector<1x1xf32> to vector<1x128xf32>
    %19 = arith.addf %16, %18 : vector<1x128xf32>
    %20 = math.tanh %19 : vector<1x128xf32>
    %c0_17 = arith.constant 0 : index
    %c0_18 = arith.constant 0 : index
    %21 = vector.load %arg8[%c0_17, %c0_18] : memref<1x128xf32, #tpu.memory_space<vmem>>, vector<1x128xf32>
    tpu.vector_store %arg8[%c0_17, %c0_18], %20 {strides = array<i32>} : memref<1x128xf32, #tpu.memory_space<vmem>>, vector<1x128xf32>,
    return
  }
  func.func @transform_0(%arg0: i32) -> (i32, i32) {
    %c0_i32 = arith.constant 0 : i32
    %c0_i32_0 = arith.constant 0 : i32
    return %c0_i32, %arg0 : i32, i32
  }
  func.func @transform_1(%arg0: i32) -> (i32, i32) {
    %c0_i32 = arith.constant 0 : i32
    %c0_i32_0 = arith.constant 0 : i32
    %c0_i32_1 = arith.constant 0 : i32
    return %c0_i32, %c0_i32_0 : i32, i32
  }
  func.func @transform_2(%arg0: i32) -> (i32, i32) {
    %c0_i32 = arith.constant 0 : i32
    %c0_i32_0 = arith.constant 0 : i32
    %c0_i32_1 = arith.constant 0 : i32
    return %c0_i32, %c0_i32_0 : i32, i32
  }
  func.func @transform_3(%arg0: i32) -> (i32, i32) {
    %c0_i32 = arith.constant 0 : i32
    %c0_i32_0 = arith.constant 0 : i32
    %c0_i32_1 = arith.constant 0 : i32
    return %c0_i32, %c0_i32_0 : i32, i32
  }
  func.func @transform_4(%arg0: i32) -> (i32, i32) {
    %c0_i32 = arith.constant 0 : i32
    %c0_i32_0 = arith.constant 0 : i32
    %c0_i32_1 = arith.constant 0 : i32
    return %c0_i32, %c0_i32_0 : i32, i32
  }
  func.func @transform_5(%arg0: i32) -> (i32, i32) {
    %c0_i32 = arith.constant 0 : i32
    %c0_i32_0 = arith.constant 0 : i32
    %c0_i32_1 = arith.constant 0 : i32
    return %c0_i32, %c0_i32_0 : i32, i32
  }
  func.func @transform_6(%arg0: i32) -> (i32, i32) {
    %c0_i32 = arith.constant 0 : i32
    %c0_i32_0 = arith.constant 0 : i32
    %c0_i32_1 = arith.constant 0 : i32
    return %c0_i32, %c0_i32_0 : i32, i32
  }
  func.func @transform_7(%arg0: i32) -> (i32, i32) {
    %c0_i32 = arith.constant 0 : i32
    %c0_i32_0 = arith.constant 0 : i32
    return %c0_i32, %arg0 : i32, i32
  }
}

</mosaic_0001>

<bundles_post_ra>
// kernel: tpu_custom_call.1
= control target key start
LH: loop header
LB: loop body
LE: loop exit
PB: predicated region body
PF: predicated region fallthrough
CT: control target
= control target key end

     0   :  { %s2388_s0 = inlined_call_operand.vmem [shape: f32[9,512], index: 0, kind: input, shape index: {}]   ;;  %s2389_s1 = inlined_call_operand.vmem [shape: f32[256,9], index: 1, kind: input, shape index: {}]   ;;  %s2390_s2 = inlined_call_operand.vmem [shape: f32[256,1], index: 2, kind: input, shape index: {}]   ;;  %s2391_s3 = inlined_call_operand.vmem [shape: f32[128,256], index: 3, kind: input, shape index: {}]   ;;  %s2392_s4 = inlined_call_operand.vmem [shape: f32[128,1], index: 4, kind: input, shape index: {}]   ;;  %s2393_s5 = inlined_call_operand.vmem [shape: f32[1,128], index: 5, kind: input, shape index: {}]   ;;  %s2394_s6 = inlined_call_operand.<no memory space> [shape: f32[1,1], index: 6, kind: input, shape index: {}]   ;;  %s2395_s7 = inlined_call_operand.hbm [shape: f32[1,512], index: 7, kind: output, shape index: {}]  }
   0x1   :  { %v12_v0 = vstv %s2394_s6 }
   0x2   :  { %13 = vst [vmem:[#allocation2] sm:$0x1] %v12_v0 }
   0x3   :  { %14 = vsyncpa [#allocation5], 0 }
   0x4   :  { %16 = vsyncpa [#allocation5 + $0x1], 0  ;;  %s1830_s26 = smov 0   ;;  %s1832_s27 = smov 0  }
   0x5   :  { %s1834_s28 = smov 0   ;;  %s1836_s29 = smov 0  }
   0x6 LB: > { %s1345_s6 = sadd.s32 4294967295, %s1779_s29   ;;  %s1346_s30 = sadd.s32 4294967294, %s1779_s29   ;;  %s1779_s29 = sphi %s1836_s29, %s2401_s29   ;;  %s1775_s28 = sphi %s1834_s28, %s2400_s28   ;;  %s1771_s27 = sphi %s1832_s27, %s2399_s27   ;;  %s1767_s26 = sphi %s1830_s26, %s2398_s26  }
   0x7   : > { %s1853_s8 = sadd.s32 1, %s1779_s29   ;;  %s29_s9 = sadd.s32 1, %s1775_s28 }
   0x8   : > { %s26_s10 = ssub.s32 %s1779_s29, %s1853_s8  ;;  %p36_p0 = scmp.ne.s32.totalorder %s1775_s28, %s1771_s27 }
   0x9   : > { %p27_p1 = scmp.eq.s32.totalorder %s26_s10, 0  ;;  %p37_p2 = scmp.eq.s32.totalorder %s1779_s29, 0 }
   0xa   : > { %p192_p3 = scmp.eq.s32.totalorder %s1345_s6, 3  ;;  %p197_p4 = scmp.ne.s32.totalorder %s1771_s27, %s1767_s26 }
   0xb   : > { %s1866_s11 = scalar_select %p27_p1, %s1775_s28, %s29_s9  }
   0xc   : > { %p38_p5 = por %p37_p2, %p36_p0  ;;  %p1868_p6 = por %p192_p3, %p36_p0 }
   0xd   : > { %p198_p7 = scmp.eq.s32.totalorder %s1346_s30, 3  ;;  %p1348_p9 = scmp.ge.s32.totalorder %s1779_s29, 4 }
   0xf   : > { %p1872_p8 = por %p198_p7, %p197_p4  ;;  %232 = sbr.rel (%p1348_p9) target bundleno = 29 (0x1d), region = 40 }
  0x16   : > { %235 = sbr.rel (!%p38_p5) target bundleno = 29 (0x1d), region = 44  ;;  %s237_s14 = sand.u32 (%p38_p5), 1, %s1775_s28  }
  0x17   : > { %s1350_s15 = sshll.u32 (%p38_p5), %s1779_s29, 3  ;;  %s1349_s16 = sshll.u32 (%p38_p5), %s237_s14, 4 }
  0x18   : > { %s241_s19 = scalar_lea.vmem (%p38_p5), %s2388_s0, %s1350_s15  ;;  %s239_s20 = scalar_lea.vmem (%p38_p5), [#allocation3], %s1349_s16 }
  0x19   : > { %v271_v1 = vld [vmem:[%s241_s19] sm:$0xff] (%p38_p5) }
  0x1a   : > { %v273_v2 = vld [vmem:[%s241_s19 + $0x20] sm:$0xff] (%p38_p5)  ;;  %272 = vst [vmem:[%s239_s20] sm:$0xff] (%p38_p5), %v271_v1 }
  0x1b   : > { %274 = vst [vmem:[%s239_s20 + $0x8] sm:$0xff] (%p38_p5), %v273_v2 }
  0x1d PF: > { %p1351_p10 = scmp.ge.s32.totalorder %s1779_s29, 1  ;;  %p279_p11 = scmp.lt.s32.totalorder %s1779_s29, 5 }
  0x1f   : > { %p280_p12 = pnand %p1351_p10, %p279_p11 }
  0x20   : > { %v366_v3 = vld [vmem:[%s2390_s2 + $0x80] sm:$0xff] (!%p280_p12)  ;;  %s1891_s25 = sand.u32 (!%p280_p12), 1, %s1771_s27   ;;  %vm639_vm0 = vcmask (!%p280_p12), 1040384   ;;  %v1781_v5 = vmov (!%p280_p12), 0   ;;  %vm542_vm1 = vcmask (!%p280_p12), 72704   ;;  %v367_v7 = vld [vmem:[%s2390_s2 + $0x88] sm:$0xff] (!%p280_p12) }
  0x21   : > { %283 = sbr.rel (%p280_p12) target bundleno = 848 (0x350), region = 82  ;;  %v350_v4 = vld [vmem:[%s2390_s2] sm:$0xff] (!%p280_p12)  ;;  %1713 = vset.pattern.permute.xlu0 (!%p280_p12), %v1781_v5  ;;  %1714 = vset.pattern.permute.xlu1 (!%p280_p12), %v1781_v5  ;;  %s1352_s30 = sshll.u32 (!%p280_p12), %s1891_s25, 4  ;;  %vm1782_vm2 = vmmov (!%p280_p12), 1   ;;  %v351_v11 = vld [vmem:[%s2390_s2 + $0x8] sm:$0xff] (!%p280_p12)  ;;  %v368_v12 = vld [vmem:[%s2390_s2 + $0x90] sm:$0xff] (!%p280_p12) }
  0x22   : > { %v318_v6 = vld [vmem:[%s2389_s1] sm:$0xff] (!%p280_p12)  ;;  %464 = vperm.xlu0 (!%p280_p12), %1713, %v366_v3   ;;  %384 = vperm.xlu1 (!%p280_p12), %1714, %v350_v4   ;;  %s288_s16 = scalar_lea.vmem (!%p280_p12), [#allocation3], %s1352_s30  ;;  %vm1608_vm3 = vmpackc.low (!%p280_p12), %vm639_vm0, %vm1782_vm2  ;;  %v319_v13 = vld [vmem:[%s2389_s1 + $0x8] sm:$0xff] (!%p280_p12)  ;;  %vm1784_vm4 = vmmov (!%p280_p12), 0   ;;  %s1386_s30 = sshll.u32 (!%p280_p12), %s1345_s6, 4 }
  0x23   : > { %v316_v8 = vld [vmem:[%s288_s16] sm:$0xff] (!%p280_p12)  ;;  %v317_v9 = vld [vmem:[%s288_s16 + $0x8] sm:$0x1] (!%p280_p12)  ;;  %1524 = vmatprep.mubr.msk.f32.mxu0 (!%p280_p12), %vm542_vm1, %v318_v6  ;;  %s315_s9 = scalar_lea.vmem (!%p280_p12), [#allocation4], %s1891_s25  ;;  %s2345_s16 = scalar_lea.hbm (!%p280_p12), %s2395_s7, %s1386_s30 }
  0x24   : > { %v1607_v10 = vpack.c.bf16 (!%p280_p12), %v317_v9, %v316_v8  ;;  %v369_v14 = vld [vmem:[%s2390_s2 + $0x98] sm:$0xff] (!%p280_p12)  ;;  %v320_v15 = vld [vmem:[%s2389_s1 + $0x10] sm:$0xff] (!%p280_p12)  ;;  %v322_v19 = vld [vmem:[%s2389_s1 + $0x20] sm:$0xff] (!%p280_p12)  ;;  %s1285_s10 = sshll.u32 (!%p280_p12), %s315_s9, 4  ;;  %s1273_s17 = scalar_lea.sflag (!%p280_p12), [#allocation5], %s1891_s25  ;;  %s2347_s10 = int_to_ptr.vmem [resolvable:$true] %s1285_s10 }
  0x25   : > { %v352_v16 = vld [vmem:[%s2390_s2 + $0x10] sm:$0xff] (!%p280_p12)  ;;  %v321_v17 = vld [vmem:[%s2389_s1 + $0x18] sm:$0xff] (!%p280_p12)  ;;  %v370_v20 = vld [vmem:[%s2390_s2 + $0xa0] sm:$0xff] (!%p280_p12)  ;;  %s1717_s18 = scalar_lea.vmem (!%p280_p12), %s2347_s10, 16  ;;  %s1786_s6 = smov (!%p280_p12), [#allocation4]  }
  0x26   : > { %469 = vperm.xlu0 (!%p280_p12), %1713, %v367_v7   ;;  %1609 = vmatprep.subr.msk.bf16.mxu0 (!%p280_p12), %vm1608_vm3, %v1607_v10  ;;  %v353_v18 = vld [vmem:[%s2390_s2 + $0x18] sm:$0xff] (!%p280_p12)  ;;  %v323_v21 = vld [vmem:[%s2389_s1 + $0x28] sm:$0xff] (!%p280_p12)  ;;  %v324_v23 = vld [vmem:[%s2389_s1 + $0x30] sm:$0xff] (!%p280_p12)  ;;  %p1718_p13 = scmp.ne.s32.totalorder (!%p280_p12), %s2347_s10, %s1717_s18  ;;  %s1721_s19 = sshll.u32 (!%p280_p12), %s1786_s6, 4  ;;  %s1722_s19 = int_to_ptr.vmem [resolvable:$false] %s1721_s19 }
  0x27   : > { %1612 = vmatpush3.bf16.msk.msra.mxu0 (!%p280_p12), %vm1608_vm3, %v1607_v10  ;;  %389 = vperm.xlu1 (!%p280_p12), %1714, %v351_v11   ;;  %v371_v22 = vld [vmem:[%s2390_s2 + $0xa8] sm:$0xff] (!%p280_p12)  ;;  %v354_v24 = vld [vmem:[%s2390_s2 + $0x20] sm:$0xff] (!%p280_p12)  ;;  %v325_v25 = vld [vmem:[%s2389_s1 + $0x38] sm:$0xff] (!%p280_p12)  ;;  %s1723_s20 = scalar_lea.vmem (!%p280_p12), %s1722_s19, 32  ;;  %p1724_p2 = scmp.lt.s32.totalorder (!%p280_p12), %s2347_s10, %s1722_s19 }
  0x28   : > { %v355_v26 = vld [vmem:[%s2390_s2 + $0x28] sm:$0xff]  ;;  %v326_v27 = vld [vmem:[%s2389_s1 + $0x40] sm:$0xff]  ;;  %v372_v28 = vld [vmem:[%s2390_s2 + $0xb0] sm:$0xff]  ;;  %p1719_p0 = pnand %p1718_p13, %p1868_p6  ;;  %p1725_p3 = scmp.lt.s32.totalorder %s1723_s20, %s1717_s18 }
  0x29   : > { %v327_v29 = vld [vmem:[%s2389_s1 + $0x48] sm:$0xff]  ;;  %v373_v30 = vld [vmem:[%s2390_s2 + $0xb8] sm:$0xff]  ;;  %v328_v31 = vld [vmem:[%s2389_s1 + $0x50] sm:$0xff] }
  0x2a   : > { %474 = vperm.xlu0 %1713, %v368_v12   ;;  %1525 = vmatmul.mubr.msk.f32.vlgmr.msra.gmra.mrb[0].mxu0 %vm542_vm1, %v319_v13  ;;  %v356_v32 = vld [vmem:[%s2390_s2 + $0x30] sm:$0xff]  ;;  %v329_v33 = vld [vmem:[%s2389_s1 + $0x58] sm:$0xff]  ;;  %v330_v35 = vld [vmem:[%s2389_s1 + $0x60] sm:$0xff]  ;;  %p1720_p1 = pneg %p1719_p0  ;;  %p1726_p4 = por %p1725_p3, %p1724_p2 }
  0x2b   : > { %479 = vperm.xlu1 %1714, %v369_v14   ;;  %1527 = vmatprep.mubr.msk.f32.mxu0 %vm542_vm1, %v320_v15  ;;  %v357_v34 = vld [vmem:[%s2390_s2 + $0x38] sm:$0xff]  ;;  %v374_v36 = vld [vmem:[%s2390_s2 + $0xc0] sm:$0xff]  ;;  %v331_v37 = vld [vmem:[%s2389_s1 + $0x68] sm:$0xff] }
  0x2c   : > { %v375_v38 = vld [vmem:[%s2390_s2 + $0xc8] sm:$0xff]  ;;  %v332_v39 = vld [vmem:[%s2389_s1 + $0x70] sm:$0xff]  ;;  %v358_v40 = vld [vmem:[%s2390_s2 + $0x40] sm:$0xff]  ;;  %p1727_p5 = pnand %p1726_p4, %p1720_p1 }
  0x2d   : > { %v333_v41 = vld [vmem:[%s2389_s1 + $0x78] sm:$0xff]  ;;  %v359_v42 = vld [vmem:[%s2390_s2 + $0x48] sm:$0xff]  ;;  %v334_v43 = vld [vmem:[%s2389_s1 + $0x80] sm:$0xff] }
  0x2e   : > { %394 = vperm.xlu0 %1713, %v352_v16   ;;  %1528 = vmatmul.mubr.msk.f32.gmra.mrb[2].mxu0 %vm542_vm1, %v321_v17  ;;  %v376_v44 = vld [vmem:[%s2390_s2 + $0xd0] sm:$0xff]  ;;  %v335_v45 = vld [vmem:[%s2389_s1 + $0x88] sm:$0xff]  ;;  %v377_v46 = vld [vmem:[%s2390_s2 + $0xd8] sm:$0xff] }
  0x2f   : > { %399 = vperm.xlu1 %1714, %v353_v18   ;;  %1530 = vmatprep.mubr.msk.f32.mxu0 %vm542_vm1, %v322_v19  ;;  %v336_v47 = vld [vmem:[%s2389_s1 + $0x90] sm:$0xff]  ;;  %v337_v49 = vld [vmem:[%s2389_s1 + $0x98] sm:$0xff]  ;;  %v338_v51 = vld [vmem:[%s2389_s1 + $0xa0] sm:$0xff] }
  0x30   : > { %v360_v48 = vld [vmem:[%s2390_s2 + $0x50] sm:$0xff]  ;;  %v361_v50 = vld [vmem:[%s2390_s2 + $0x58] sm:$0xff]  ;;  %v378_v52 = vld [vmem:[%s2390_s2 + $0xe0] sm:$0xff] }
  0x31   : > { %v339_v53 = vld [vmem:[%s2389_s1 + $0xa8] sm:$0xff]  ;;  %v340_v55 = vld [vmem:[%s2389_s1 + $0xb0] sm:$0xff]  ;;  %v362_v56 = vld [vmem:[%s2390_s2 + $0x60] sm:$0xff] }
  0x32   : > { %484 = vperm.xlu0 %1713, %v370_v20   ;;  %1531 = vmatmul.mubr.msk.f32.gmra.mrb[4].mxu0 %vm542_vm1, %v323_v21  ;;  %v379_v54 = vld [vmem:[%s2390_s2 + $0xe8] sm:$0xff]  ;;  %v341_v57 = vld [vmem:[%s2389_s1 + $0xb8] sm:$0xff]  ;;  %v342_v59 = vld [vmem:[%s2389_s1 + $0xc0] sm:$0xff] }
  0x33   : > { %489 = vperm.xlu1 %1714, %v371_v22   ;;  %1533 = vmatprep.mubr.msk.f32.mxu0 %vm542_vm1, %v324_v23  ;;  %v363_v58 = vld [vmem:[%s2390_s2 + $0x68] sm:$0xff]  ;;  %v380_v60 = vld [vmem:[%s2390_s2 + $0xf0] sm:$0xff]  ;;  %v381_v62 = vld [vmem:[%s2390_s2 + $0xf8] sm:$0xff] }
  0x34   : > { %v343_v61 = vld [vmem:[%s2389_s1 + $0xc8] sm:$0xff]  ;;  %v344_v63 = vld [vmem:[%s2389_s1 + $0xd0] sm:$0xff]  ;;  %v345_v1 = vld [vmem:[%s2389_s1 + $0xd8] sm:$0xff] }
  0x35   : > { %v364_v0 = vld [vmem:[%s2390_s2 + $0x70] sm:$0xff]  ;;  %v365_v2 = vld [vmem:[%s2390_s2 + $0x78] sm:$0xff]  ;;  %v346_v3 = vld [vmem:[%s2389_s1 + $0xe0] sm:$0xff] }
  0x36   : > { %404 = vperm.xlu0 %1713, %v354_v24   ;;  %1534 = vmatmul.mubr.msk.f32.gmra.mrb[6].mxu0 %vm542_vm1, %v325_v25  ;;  %v932_v4 = vld [vmem:[%s2392_s4] sm:$0xff]  ;;  %v347_v5 = vld [vmem:[%s2389_s1 + $0xe8] sm:$0xff]  ;;  %v348_v7 = vld [vmem:[%s2389_s1 + $0xf0] sm:$0xff] }
  0x37   : > { %409 = vperm.xlu1 %1714, %v355_v26   ;;  %1536 = vmatprep.mubr.msk.f32.mxu0 %vm542_vm1, %v326_v27  ;;  %v933_v6 = vld [vmem:[%s2392_s4 + $0x8] sm:$0xff]  ;;  %v934_v8 = vld [vmem:[%s2392_s4 + $0x10] sm:$0xff]  ;;  %v349_v9 = vld [vmem:[%s2389_s1 + $0xf8] sm:$0xff] }
  0x38   : > { %v935_v10 = vld [vmem:[%s2392_s4 + $0x18] sm:$0xff]  ;;  %v936_v11 = vld [vmem:[%s2392_s4 + $0x20] sm:$0xff]  ;;  %v937_v12 = vld [vmem:[%s2392_s4 + $0x28] sm:$0xff] }
  0x39   : > { %v938_v13 = vld [vmem:[%s2392_s4 + $0x30] sm:$0xff]  ;;  %v939_v14 = vld [vmem:[%s2392_s4 + $0x38] sm:$0xff]  ;;  %v940_v15 = vld [vmem:[%s2392_s4 + $0x40] sm:$0xff] }
  0x3a   : > { %494 = vperm.xlu0 %1713, %v372_v28   ;;  %1537 = vmatmul.mubr.msk.f32.gmra.mrb[8].mxu0 %vm542_vm1, %v327_v29  ;;  %v941_v16 = vld [vmem:[%s2392_s4 + $0x48] sm:$0xff]  ;;  %v942_v17 = vld [vmem:[%s2392_s4 + $0x50] sm:$0xff]  ;;  %v943_v18 = vld [vmem:[%s2392_s4 + $0x58] sm:$0xff] }
  0x3b   : > { %499 = vperm.xlu1 %1714, %v373_v30   ;;  %1539 = vmatprep.mubr.msk.f32.mxu0 %vm542_vm1, %v328_v31  ;;  %v944_v19 = vld [vmem:[%s2392_s4 + $0x60] sm:$0xff]  ;;  %v945_v20 = vld [vmem:[%s2392_s4 + $0x68] sm:$0xff]  ;;  %v946_v21 = vld [vmem:[%s2392_s4 + $0x70] sm:$0xff] }
  0x3c   : > { %v947_v22 = vld [vmem:[%s2392_s4 + $0x78] sm:$0xff]  ;;  %v1190_v23 = vld [vmem:[#allocation2] sm:$0x1]  ;;  %v901_v26 = vld [vmem:[%s2391_s3 + $0x8] sm:$0xff] }
  0x3d   : > { %1092 = vmatprep.mubr.f32.mxu1 %v901_v26 }
  0x3e   : > { %414 = vperm.xlu0 %1713, %v356_v32   ;;  %1540 = vmatmul.mubr.msk.f32.gmra.mrb[10].mxu0 %vm542_vm1, %v329_v33 }
  0x3f   : > { %419 = vperm.xlu1 %1714, %v357_v34   ;;  %1542 = vmatprep.mubr.msk.f32.mxu0 %vm542_vm1, %v330_v35 }
  0x42   : > { %504 = vperm.xlu0 %1713, %v374_v36   ;;  %1543 = vmatmul.mubr.msk.f32.gmra.mrb[12].mxu0 %vm542_vm1, %v331_v37 }
  0x43   : > { %509 = vperm.xlu1 %1714, %v375_v38   ;;  %1545 = vmatprep.mubr.msk.f32.mxu0 %vm542_vm1, %v332_v39 }
  0x46   : > { %424 = vperm.xlu0 %1713, %v358_v40   ;;  %1546 = vmatmul.mubr.msk.f32.gmra.mrb[14].mxu0 %vm542_vm1, %v333_v41 }
  0x47   : > { %429 = vperm.xlu1 %1714, %v359_v42   ;;  %1548 = vmatprep.mubr.msk.f32.mxu0 %vm542_vm1, %v334_v43 }
  0x4a   : > { %514 = vperm.xlu0 %1713, %v376_v44   ;;  %1549 = vmatmul.mubr.msk.f32.gmra.mrb[16].mxu0 %vm542_vm1, %v335_v45 }
  0x4b   : > { %519 = vperm.xlu1 %1714, %v377_v46   ;;  %1551 = vmatprep.mubr.msk.f32.mxu0 %vm542_vm1, %v336_v47 }
  0x4e   : > { %434 = vperm.xlu0 %1713, %v360_v48   ;;  %1552 = vmatmul.mubr.msk.f32.gmra.mrb[18].mxu0 %vm542_vm1, %v337_v49 }
  0x4f   : > { %439 = vperm.xlu1 %1714, %v361_v50   ;;  %1554 = vmatprep.mubr.msk.f32.mxu0 %vm542_vm1, %v338_v51 }
  0x52   : > { %524 = vperm.xlu0 %1713, %v378_v52   ;;  %1555 = vmatmul.mubr.msk.f32.gmra.mrb[20].mxu0 %vm542_vm1, %v339_v53 }
  0x53   : > { %529 = vperm.xlu1 %1714, %v379_v54   ;;  %1557 = vmatprep.mubr.msk.f32.mxu0 %vm542_vm1, %v340_v55 }
  0x56   : > { %444 = vperm.xlu0 %1713, %v362_v56   ;;  %1558 = vmatmul.mubr.msk.f32.gmra.mrb[22].mxu0 %vm542_vm1, %v341_v57 }
  0x57   : > { %449 = vperm.xlu1 %1714, %v363_v58   ;;  %1560 = vmatprep.mubr.msk.f32.mxu0 %vm542_vm1, %v342_v59 }
  0x5a   : > { %534 = vperm.xlu0 %1713, %v380_v60   ;;  %1561 = vmatmul.mubr.msk.f32.gmra.mrb[24].mxu0 %vm542_vm1, %v343_v61 }
  0x5b   : > { %539 = vperm.xlu1 %1714, %v381_v62   ;;  %1563 = vmatprep.mubr.msk.f32.mxu0 %vm542_vm1, %v344_v63 }
  0x5e   : > { %454 = vperm.xlu0 %1713, %v364_v0   ;;  %1564 = vmatmul.mubr.msk.f32.gmra.mrb[26].mxu0 %vm542_vm1, %v345_v1 }
  0x5f   : > { %459 = vperm.xlu1 %1714, %v365_v2   ;;  %1566 = vmatprep.mubr.msk.f32.mxu0 %vm542_vm1, %v346_v3 }
  0x62   : > { %950 = vperm.xlu0 %1713, %v932_v4   ;;  %1567 = vmatmul.mubr.msk.f32.gmra.mrb[28].mxu0 %vm542_vm1, %v347_v5 }
  0x63   : > { %955 = vperm.xlu1 %1714, %v933_v6   ;;  %1569 = vmatprep.mubr.msk.f32.mxu0 %vm542_vm1, %v348_v7 }
  0x66   : > { %960 = vperm.xlu0 %1713, %v934_v8   ;;  %1570 = vmatmul.mubr.msk.f32.gmra.mrb[30].mxu0 %vm542_vm1, %v349_v9 }
  0x67   : > { %965 = vperm.xlu1 %1714, %v935_v10  }
  0x6a   : > { %970 = vperm.xlu0 %1713, %v936_v11  }
  0x6b   : > { %975 = vperm.xlu1 %1714, %v937_v12  }
  0x6e   : > { %980 = vperm.xlu0 %1713, %v938_v13  }
  0x6f   : > { %985 = vperm.xlu1 %1714, %v939_v14  }
  0x72   : > { %990 = vperm.xlu0 %1713, %v940_v15  }
  0x73   : > { %995 = vperm.xlu1 %1714, %v941_v16  }
  0x76   : > { %1000 = vperm.xlu0 %1713, %v942_v17  }
  0x77   : > { %1005 = vperm.xlu1 %1714, %v943_v18  }
  0x7a   : > { %1010 = vperm.xlu0 %1713, %v944_v19  }
  0x7b   : > { %1015 = vperm.xlu1 %1714, %v945_v20  }
  0x7e   : > { %1020 = vperm.xlu0 %1713, %v946_v21  }
  0x7f   : > { %1025 = vperm.xlu1 %1714, %v947_v22  }
  0x82   : > { %1193 = vperm.xlu0 %1713, %v1190_v23  }
  0xa1   : > { %v385_v24 = vpop.permute.xlu1 %384  ;;  %v2160_v25 = vpop.permute.xlu0 %464 }
  0xa5   : > { %v2165_v28 = vpop.permute.xlu0 %469 }
  0xa6   : > { %v390_v27 = vpop.permute.xlu1 %389 }
  0xa9   : > { %v2169_v30 = vpop.permute.xlu0 %474 }
  0xaa   : > { %v2167_v29 = vpop.permute.xlu1 %479 }
  0xad   : > { %v395_v32 = vpop.permute.xlu0 %394 }
  0xae   : > { %v400_v31 = vpop.permute.xlu1 %399 }
  0xb1   : > { %v2173_v34 = vpop.permute.xlu0 %484 }
  0xb2   : > { %v2171_v33 = vpop.permute.xlu1 %489 }
  0xb5   : > { %v405_v36 = vpop.permute.xlu0 %404 }
  0xb6   : > { %v410_v35 = vpop.permute.xlu1 %409 }
  0xb9   : > { %v2177_v38 = vpop.permute.xlu0 %494 }
  0xba   : > { %v2175_v37 = vpop.permute.xlu1 %499 }
  0xbd   : > { %v415_v40 = vpop.permute.xlu0 %414 }
  0xbe   : > { %v420_v39 = vpop.permute.xlu1 %419 }
  0xc1   : > { %v2181_v42 = vpop.permute.xlu0 %504 }
  0xc2   : > { %v2179_v41 = vpop.permute.xlu1 %509 }
  0xc5   : > { %v425_v44 = vpop.permute.xlu0 %424 }
  0xc6   : > { %v430_v43 = vpop.permute.xlu1 %429 }
  0xc9   : > { %v2185_v46 = vpop.permute.xlu0 %514 }
  0xca   : > { %v2183_v45 = vpop.permute.xlu1 %519 }
  0xcd   : > { %v435_v55 = vpop.permute.xlu0 %434 }
  0xce   : > { %v440_v52 = vpop.permute.xlu1 %439 }
  0xd1   : > { %v2193_v4 = vpop.permute.xlu0 %524 }
  0xd2   : > { %v2189_v1 = vpop.permute.xlu1 %529 }
  0xd5   : > { %v445_v16 = vpop.permute.xlu0 %444 }
  0xd6   : > { %v450_v13 = vpop.permute.xlu1 %449 }
  0xfd   : > { %v1526_v47 = vpop.f32.mrb[0].mxu0 }
  0xfe   : > { %v715_v48 = vadd.f32 %v1526_v47, %v390_v27  ;;  %v709_v49 = vpop.f32.mrb[1].mxu0  ;;  %v2199_v27 = vpop.permute.xlu1 %539 }
  0xff   : > { %v710_v50 = vadd.f32 %v709_v49, %v385_v24 }
 0x100   : > { %v869_v51 = vmax.f32 %v715_v48, 0.0 }
 0x101   : > { %v868_v53 = vmax.f32 %v710_v50, 0.0  ;;  %v1529_v54 = vpop.f32.mrb[2].mxu0 }
 0x102   : > { %v725_v56 = vadd.f32 %v1529_v54, %v400_v31  ;;  %v719_v57 = vpop.f32.mrb[3].mxu0  ;;  %v460_v50 = vpop.permute.xlu1 %459 }
 0x103   : > { %v720_v58 = vadd.f32 %v719_v57, %v395_v32  ;;  %v2187_v59 = vpack.c.bf16 %v869_v51, %v868_v53 }
 0x104   : > { %v871_v60 = vmax.f32 %v725_v56, 0.0 }
 0x105   : > { %v870_v61 = vmax.f32 %v720_v58, 0.0  ;;  %v1532_v62 = vpop.f32.mrb[4].mxu0 }
 0x106   : > { %v735_v63 = vadd.f32 %v1532_v62, %v410_v35  ;;  %v729_v0 = vpop.f32.mrb[5].mxu0  ;;  %v2203_v35 = vpop.permute.xlu0 %534 }
 0x107   : > { %v2191_v2 = vpack.c.bf16 %v871_v60, %v870_v61  ;;  %v730_v3 = vadd.f32 %v729_v0, %v405_v36 }
 0x108   : > { %v873_v5 = vmax.f32 %v735_v63, 0.0 }
 0x109   : > { %v872_v6 = vmax.f32 %v730_v3, 0.0  ;;  %v1535_v7 = vpop.f32.mrb[6].mxu0 }
 0x10a   : > { %v745_v8 = vadd.f32 %v1535_v7, %v420_v39  ;;  %v739_v9 = vpop.f32.mrb[7].mxu0  ;;  %v455_v53 = vpop.permute.xlu0 %454 }
 0x10b   : > { %v2195_v10 = vpack.c.bf16 %v873_v5, %v872_v6  ;;  %v740_v11 = vadd.f32 %v739_v9, %v415_v40 }
 0x10c   : > { %v875_v12 = vmax.f32 %v745_v8, 0.0 }
 0x10d   : > { %v874_v14 = vmax.f32 %v740_v11, 0.0  ;;  %v1538_v15 = vpop.f32.mrb[8].mxu0 }
 0x10e   : > { %v755_v17 = vadd.f32 %v1538_v15, %v430_v43  ;;  %v749_v18 = vpop.f32.mrb[9].mxu0 }
 0x10f   : > { %v2197_v19 = vpack.c.bf16 %v875_v12, %v874_v14  ;;  %v750_v20 = vadd.f32 %v749_v18, %v425_v44 }
 0x110   : > { %v877_v21 = vmax.f32 %v755_v17, 0.0 }
 0x111   : > { %v876_v22 = vmax.f32 %v750_v20, 0.0  ;;  %v1541_v23 = vpop.f32.mrb[10].mxu0 }
 0x112   : > { %v765_v24 = vadd.f32 %v1541_v23, %v440_v52  ;;  %v759_v26 = vpop.f32.mrb[11].mxu0 }
 0x113   : > { %v2201_v31 = vpack.c.bf16 %v877_v21, %v876_v22  ;;  %v760_v32 = vadd.f32 %v759_v26, %v435_v55 }
 0x114   : > { %v879_v36 = vmax.f32 %v765_v24, 0.0 }
 0x115   : > { %v878_v39 = vmax.f32 %v760_v32, 0.0  ;;  %v1544_v40 = vpop.f32.mrb[12].mxu0 }
 0x116   : > { %v775_v43 = vadd.f32 %v1544_v40, %v450_v13  ;;  %v769_v47 = vpop.f32.mrb[13].mxu0 }
 0x117   : > { %v2205_v48 = vpack.c.bf16 %v879_v36, %v878_v39  ;;  %v770_v44 = vadd.f32 %v769_v47, %v445_v16 }
 0x118   : > { %v881_v49 = vmax.f32 %v775_v43, 0.0 }
 0x119   : > { %v880_v51 = vmax.f32 %v770_v44, 0.0  ;;  %v1547_v52 = vpop.f32.mrb[14].mxu0 }
 0x11a   : > { %v785_v54 = vadd.f32 %v1547_v52, %v460_v50  ;;  %v779_v56 = vpop.f32.mrb[15].mxu0 }
 0x11b   : > { %v2207_v57 = vpack.c.bf16 %v881_v49, %v880_v51  ;;  %v780_v55 = vadd.f32 %v779_v56, %v455_v53 }
 0x11c   : > { %v883_v58 = vmax.f32 %v785_v54, 0.0 }
 0x11d   : > { %v882_v60 = vmax.f32 %v780_v55, 0.0  ;;  %v1550_v61 = vpop.f32.mrb[16].mxu0 }
 0x11e   : > { %v795_v62 = vadd.f32 %v1550_v61, %v2165_v28  ;;  %v789_v63 = vpop.f32.mrb[17].mxu0  ;;  %v909_v61 = vld [vmem:[%s2391_s3 + $0x48] sm:$0xff] }
 0x11f   : > { %v2210_v0 = vpack.c.bf16 %v883_v58, %v882_v60  ;;  %v790_v3 = vadd.f32 %v789_v63, %v2160_v25  ;;  %v907_v58 = vld [vmem:[%s2391_s3 + $0x38] sm:$0xff]  ;;  %v906_v60 = vld [vmem:[%s2391_s3 + $0x30] sm:$0xff] }
 0x120   : > { %v885_v5 = vmax.f32 %v795_v62, 0.0  ;;  %v908_v62 = vld [vmem:[%s2391_s3 + $0x40] sm:$0xff]  ;;  %v911_v63 = vld [vmem:[%s2391_s3 + $0x58] sm:$0xff] }
 0x121   : > { %v884_v6 = vmax.f32 %v790_v3, 0.0  ;;  %v1553_v7 = vpop.f32.mrb[18].mxu0  ;;  %v913_v3 = vld [vmem:[%s2391_s3 + $0x68] sm:$0xff] }
 0x122   : > { %v805_v8 = vadd.f32 %v1553_v7, %v2167_v29  ;;  %v799_v9 = vpop.f32.mrb[19].mxu0  ;;  %v914_v7 = vld [vmem:[%s2391_s3 + $0x70] sm:$0xff] }
 0x123   : > { %v800_v11 = vadd.f32 %v799_v9, %v2169_v30  ;;  %v1613_v12 = vpack.c.bf16 %v885_v5, %v884_v6  ;;  %v912_v5 = vld [vmem:[%s2391_s3 + $0x60] sm:$0xff]  ;;  %v915_v6 = vld [vmem:[%s2391_s3 + $0x78] sm:$0xff] }
 0x124   : > { %v887_v13 = vmax.f32 %v805_v8, 0.0  ;;  %v917_v8 = vld [vmem:[%s2391_s3 + $0x88] sm:$0xff]  ;;  %v916_v9 = vld [vmem:[%s2391_s3 + $0x80] sm:$0xff] }
 0x125   : > { %v886_v14 = vmax.f32 %v800_v11, 0.0  ;;  %v1556_v15 = vpop.f32.mrb[20].mxu0  ;;  %1614 = vmatprep.subr.bf16.mxu1 %v1613_v12  ;;  %v919_v11 = vld [vmem:[%s2391_s3 + $0x98] sm:$0xff]  ;;  %v918_v12 = vld [vmem:[%s2391_s3 + $0x90] sm:$0xff] }
 0x126   : > { %v815_v28 = vadd.f32 %v1556_v15, %v2171_v33  ;;  %v809_v16 = vpop.f32.mrb[21].mxu0  ;;  %1616 = vmatpush3.bf16.msra.mxu1 %v2187_v59  ;;  %v923_v15 = vld [vmem:[%s2391_s3 + $0xb8] sm:$0xff] }
 0x127   : > { %v1617_v17 = vpack.c.bf16 %v887_v13, %v886_v14  ;;  %v810_v25 = vadd.f32 %v809_v16, %v2173_v34  ;;  %v921_v13 = vld [vmem:[%s2391_s3 + $0xa8] sm:$0xff]  ;;  %v920_v14 = vld [vmem:[%s2391_s3 + $0xa0] sm:$0xff] }
 0x128   : > { %v889_v18 = vmax.f32 %v815_v28, 0.0  ;;  %v922_v28 = vld [vmem:[%s2391_s3 + $0xb0] sm:$0xff]  ;;  %v925_v16 = vld [vmem:[%s2391_s3 + $0xc8] sm:$0xff] }
 0x129   : > { %v888_v20 = vmax.f32 %v810_v25, 0.0  ;;  %v1559_v21 = vpop.f32.mrb[22].mxu0  ;;  %1618 = vmatprep.subr.bf16.mxu1 %v1617_v17  ;;  %v924_v17 = vld [vmem:[%s2391_s3 + $0xc0] sm:$0xff]  ;;  %v927_v25 = vld [vmem:[%s2391_s3 + $0xd8] sm:$0xff] }
 0x12a   : > { %v825_v29 = vadd.f32 %v1559_v21, %v2175_v37  ;;  %v819_v30 = vpop.f32.mrb[23].mxu0  ;;  %1620 = vmatpush3.bf16.msra.mxu1 %v2191_v2  ;;  %v928_v21 = vld [vmem:[%s2391_s3 + $0xe0] sm:$0xff] }
 0x12b   : > { %v1621_v22 = vpack.c.bf16 %v889_v18, %v888_v20  ;;  %v820_v23 = vadd.f32 %v819_v30, %v2177_v38  ;;  %v926_v18 = vld [vmem:[%s2391_s3 + $0xd0] sm:$0xff]  ;;  %v929_v20 = vld [vmem:[%s2391_s3 + $0xe8] sm:$0xff] }
 0x12c   : > { %v891_v24 = vmax.f32 %v825_v29, 0.0  ;;  %v931_v29 = vld [vmem:[%s2391_s3 + $0xf8] sm:$0xff]  ;;  %v930_v30 = vld [vmem:[%s2391_s3 + $0xf0] sm:$0xff] }
 0x12d   : > { %v890_v33 = vmax.f32 %v820_v23, 0.0  ;;  %v1562_v26 = vpop.f32.mrb[24].mxu0  ;;  %1622 = vmatprep.subr.bf16.mxu1 %v1621_v22  ;;  %v1783_v22 = vmov 0.0|0.0   ;;  %v1785_v23 = vmov 0.0  }
 0x12e   : > { %v835_v59 = vadd.f32 %v1562_v26, %v2179_v41  ;;  %v829_v32 = vpop.f32.mrb[25].mxu0  ;;  %1624 = vmatpush3.bf16.msra.mxu1 %v2195_v10  ;;  %1645 = vmatprep.subr.bf16.mxu0 %v1783_v22 }
 0x12f   : > { %v1625_v34 = vpack.c.bf16 %v891_v24, %v890_v33  ;;  %v830_v36 = vadd.f32 %v829_v32, %v2181_v42  ;;  %1604 = vmatprep.mubr.msk.f32.mxu0 %vm1784_vm4, %v1785_v23  ;;  %v951_v32 = vpop.permute.xlu0 %950 }
 0x130   : > { %v893_v39 = vmax.f32 %v835_v59, 0.0 }
 0x131   : > { %v892_v37 = vmax.f32 %v830_v36, 0.0  ;;  %v1565_v40 = vpop.f32.mrb[26].mxu0  ;;  %1626 = vmatprep.subr.bf16.mxu1 %v1625_v34 }
 0x132   : > { %v845_v2 = vadd.f32 %v1565_v40, %v2183_v45  ;;  %v839_v43 = vpop.f32.mrb[27].mxu0  ;;  %1628 = vmatpush3.bf16.msra.mxu1 %v2197_v19 }
 0x133   : > { %v1629_v38 = vpack.c.bf16 %v893_v39, %v892_v37  ;;  %v840_v47 = vadd.f32 %v839_v43, %v2185_v46  ;;  %v956_v37 = vpop.permute.xlu1 %955 }
 0x134   : > { %v895_v44 = vmax.f32 %v845_v2, 0.0 }
 0x135   : > { %v894_v41 = vmax.f32 %v840_v47, 0.0  ;;  %v1568_v49 = vpop.f32.mrb[28].mxu0  ;;  %1630 = vmatprep.subr.bf16.mxu1 %v1629_v38 }
 0x136   : > { %v855_v10 = vadd.f32 %v1568_v49, %v2189_v1  ;;  %v849_v50 = vpop.f32.mrb[29].mxu0  ;;  %1632 = vmatpush3.bf16.msra.mxu1 %v2201_v31 }
 0x137   : > { %v1633_v42 = vpack.c.bf16 %v895_v44, %v894_v41  ;;  %v850_v51 = vadd.f32 %v849_v50, %v2193_v4  ;;  %v900_v4 = vld [vmem:[%s2391_s3] sm:$0xff] }
 0x138   : > { %v897_v52 = vmax.f32 %v855_v10, 0.0  ;;  %v961_v10 = vpop.permute.xlu0 %960 }
 0x139   : > { %v896_v45 = vmax.f32 %v850_v51, 0.0  ;;  %v1571_v53 = vpop.f32.mrb[30].mxu0  ;;  %1634 = vmatprep.subr.bf16.mxu1 %v1633_v42 }
 0x13a   : > { %v865_v19 = vadd.f32 %v1571_v53, %v2199_v27  ;;  %v859_v54 = vpop.f32.mrb[31].mxu0  ;;  %1636 = vmatpush3.bf16.msra.mxu1 %v2205_v48  ;;  %v903_v27 = vld [vmem:[%s2391_s3 + $0x18] sm:$0xff]  ;;  %v905_v48 = vld [vmem:[%s2391_s3 + $0x28] sm:$0xff] }
 0x13b   : > { %v1637_v46 = vpack.c.bf16 %v897_v52, %v896_v45  ;;  %v860_v56 = vadd.f32 %v859_v54, %v2203_v35  ;;  %v902_v35 = vld [vmem:[%s2391_s3 + $0x10] sm:$0xff]  ;;  %v966_v52 = vpop.permute.xlu1 %965 }
 0x13c   : > { %v899_v55 = vmax.f32 %v865_v19, 0.0 }
 0x13d   : > { %v898_v1 = vmax.f32 %v860_v56, 0.0  ;;  %1638 = vmatprep.subr.bf16.mxu1 %v1637_v46 }
 0x13e   : > { %1640 = vmatpush3.bf16.msra.mxu1 %v2207_v57  ;;  %v904_v57 = vld [vmem:[%s2391_s3 + $0x20] sm:$0xff] }
 0x13f   : > { %v1641_v31 = vpack.c.bf16 %v899_v55, %v898_v1 }
 0x141   : > { %1642 = vmatprep.subr.bf16.mxu1 %v1641_v31  ;;  %v971_v31 = vpop.permute.xlu0 %970 }
 0x142   : > { %1644 = vmatpush3.bf16.msra.mxu1 %v2210_v0  ;;  %v910_v0 = vld [vmem:[%s2391_s3 + $0x50] sm:$0xff] }
 0x145   : > { %1093 = vmatmul.mubr.f32.vlgmr.msra.gmra.mrb[0].mxu1 %v900_v4 }
 0x146   : > { %1097 = vmatprep.mubr.f32.mxu1 %v903_v27 }
 0x149   : > { %1098 = vmatmul.mubr.f32.gmra.mrb[2].mxu1 %v902_v35 }
 0x14a   : > { %1102 = vmatprep.mubr.f32.mxu1 %v905_v48  ;;  %v976_v48 = vpop.permute.xlu1 %975 }
 0x14d   : > { %1103 = vmatmul.mubr.f32.gmra.mrb[4].mxu1 %v904_v57 }
 0x14e   : > { %1107 = vmatprep.mubr.f32.mxu1 %v907_v58 }
 0x151   : > { %1108 = vmatmul.mubr.f32.gmra.mrb[6].mxu1 %v906_v60 }
 0x152   : > { %1112 = vmatprep.mubr.f32.mxu1 %v909_v61 }
 0x155   : > { %1113 = vmatmul.mubr.f32.gmra.mrb[8].mxu1 %v908_v62 }
 0x156   : > { %1117 = vmatprep.mubr.f32.mxu1 %v911_v63 }
 0x159   : > { %1118 = vmatmul.mubr.f32.gmra.mrb[10].mxu1 %v910_v0 }
 0x15a   : > { %1122 = vmatprep.mubr.f32.mxu1 %v913_v3 }
 0x15d   : > { %1123 = vmatmul.mubr.f32.gmra.mrb[12].mxu1 %v912_v5  ;;  %v981_v5 = vpop.permute.xlu0 %980 }
 0x15e   : > { %1127 = vmatprep.mubr.f32.mxu1 %v915_v6 }
 0x161   : > { %1128 = vmatmul.mubr.f32.gmra.mrb[14].mxu1 %v914_v7 }
 0x162   : > { %1132 = vmatprep.mubr.f32.mxu1 %v917_v8 }
 0x165   : > { %1133 = vmatmul.mubr.f32.gmra.mrb[16].mxu1 %v916_v9  ;;  %v986_v9 = vpop.permute.xlu1 %985 }
 0x166   : > { %1137 = vmatprep.mubr.f32.mxu1 %v919_v11 }
 0x169   : > { %1138 = vmatmul.mubr.f32.gmra.mrb[18].mxu1 %v918_v12 }
 0x16a   : > { %1142 = vmatprep.mubr.f32.mxu1 %v921_v13 }
 0x16d   : > { %1143 = vmatmul.mubr.f32.gmra.mrb[20].mxu1 %v920_v14 }
 0x16e   : > { %1147 = vmatprep.mubr.f32.mxu1 %v923_v15 }
 0x171   : > { %1148 = vmatmul.mubr.f32.gmra.mrb[22].mxu1 %v922_v28 }
 0x172   : > { %1152 = vmatprep.mubr.f32.mxu1 %v925_v16 }
 0x175   : > { %1153 = vmatmul.mubr.f32.gmra.mrb[24].mxu1 %v924_v17 }
 0x176   : > { %1157 = vmatprep.mubr.f32.mxu1 %v927_v25  ;;  %v991_v25 = vpop.permute.xlu0 %990 }
 0x179   : > { %1158 = vmatmul.mubr.f32.gmra.mrb[26].mxu1 %v926_v18 }
 0x17a   : > { %1162 = vmatprep.mubr.f32.mxu1 %v929_v20 }
 0x17d   : > { %1163 = vmatmul.mubr.f32.gmra.mrb[28].mxu1 %v928_v21 }
 0x17e   : > { %1167 = vmatprep.mubr.f32.mxu1 %v931_v29  ;;  %v996_v29 = vpop.permute.xlu1 %995 }
 0x181   : > { %1168 = vmatmul.mubr.f32.gmra.mrb[30].mxu1 %v930_v30 }
 0x218   : > { %v1455_v24 = vpop.f32.mrb[0].mxu1 }
 0x219   : > { %v1456_v33 = vpop.f32.mrb[1].mxu1 }
 0x21a   : > { %v1457_v26 = vadd.f32 %v1456_v33, %v1455_v24 }
 0x21c   : > { %v1458_v59 = vpop.f32.mrb[2].mxu1  ;;  %v1095_v36 = vadd.f32 %v1457_v26, %v951_v32 }
 0x21d   : > { %v1459_v34 = vpop.f32.mrb[3].mxu1 }
 0x21e   : > { %v1460_v39 = vadd.f32 %v1459_v34, %v1458_v59  ;;  %v1173_v38 = vmax.f32 %v1095_v36, 0.0  ;;  %v1001_v36 = vpop.permute.xlu0 %1000 }
 0x220   : > { %v1100_v40 = vadd.f32 %v1460_v39, %v956_v37  ;;  %v1461_v2 = vpop.f32.mrb[4].mxu1 }
 0x221   : > { %v1462_v43 = vpop.f32.mrb[5].mxu1 }
 0x222   : > { %v1174_v47 = vmax.f32 %v1100_v40, 0.0  ;;  %v1463_v44 = vadd.f32 %v1462_v43, %v1461_v2  ;;  %v1006_v2 = vpop.permute.xlu1 %1005 }
 0x224   : > { %v1646_v41 = vpack.c.bf16 %v1174_v47, %v1173_v38  ;;  %v1464_v49 = vpop.f32.mrb[6].mxu1  ;;  %v1105_v42 = vadd.f32 %v1463_v44, %v961_v10 }
 0x225   : > { %v1465_v50 = vpop.f32.mrb[7].mxu1 }
 0x226   : > { %v1466_v51 = vadd.f32 %v1465_v50, %v1464_v49  ;;  %1647 = vmatpush3.bf16.msra.mxu0 %v1646_v41  ;;  %v1175_v54 = vmax.f32 %v1105_v42, 0.0  ;;  %v1011_v42 = vpop.permute.xlu0 %1010 }
 0x227   : > { %1648 = vmatprep.subr.bf16.mxu0 %v1783_v22 }
 0x228   : > { %v1110_v45 = vadd.f32 %v1466_v51, %v966_v52  ;;  %v1467_v53 = vpop.f32.mrb[8].mxu1 }
 0x229   : > { %v1468_v19 = vpop.f32.mrb[9].mxu1 }
 0x22a   : > { %v1176_v46 = vmax.f32 %v1110_v45, 0.0  ;;  %v1469_v56 = vadd.f32 %v1468_v19, %v1467_v53  ;;  %v1016_v53 = vpop.permute.xlu1 %1015 }
 0x22c   : > { %v1649_v55 = vpack.c.bf16 %v1176_v46, %v1175_v54  ;;  %v1470_v1 = vpop.f32.mrb[10].mxu1  ;;  %v1115_v27 = vadd.f32 %v1469_v56, %v971_v31 }
 0x22d   : > { %v1471_v4 = vpop.f32.mrb[11].mxu1 }
 0x22e   : > { %v1472_v35 = vadd.f32 %v1471_v4, %v1470_v1  ;;  %1650 = vmatpush3.bf16.msra.mxu0 %v1649_v55  ;;  %v1177_v61 = vmax.f32 %v1115_v27, 0.0  ;;  %v1021_v27 = vpop.permute.xlu0 %1020 }
 0x22f   : > { %1651 = vmatprep.subr.bf16.mxu0 %v1783_v22 }
 0x230   : > { %v1120_v57 = vadd.f32 %v1472_v35, %v976_v48  ;;  %v1473_v58 = vpop.f32.mrb[12].mxu1 }
 0x231   : > { %v1474_v60 = vpop.f32.mrb[13].mxu1 }
 0x232   : > { %v1178_v62 = vmax.f32 %v1120_v57, 0.0  ;;  %v1475_v63 = vadd.f32 %v1474_v60, %v1473_v58  ;;  %v1026_v58 = vpop.permute.xlu1 %1025 }
 0x234   : > { %v1652_v0 = vpack.c.bf16 %v1178_v62, %v1177_v61  ;;  %v1476_v3 = vpop.f32.mrb[14].mxu1  ;;  %v1125_v7 = vadd.f32 %v1475_v63, %v981_v5 }
 0x235   : > { %v1477_v6 = vpop.f32.mrb[15].mxu1 }
 0x236   : > { %v1478_v8 = vadd.f32 %v1477_v6, %v1476_v3  ;;  %1653 = vmatpush3.bf16.msra.mxu0 %v1652_v0  ;;  %v1179_v14 = vmax.f32 %v1125_v7, 0.0  ;;  %v1189_v0 = vld [vmem:[%s2393_s5] sm:$0x1]  ;;  %v1196_v3 = vlaneseq  ;;  %v1194_v7 = vpop.permute.xlu0 %1193 }
 0x237   : > { %1654 = vmatprep.subr.bf16.mxu0 %v1783_v22 }
 0x238   : > { %v1130_v11 = vadd.f32 %v1478_v8, %v986_v9  ;;  %v1479_v12 = vpop.f32.mrb[16].mxu1  ;;  %v1197_v5 = vshrl.u32 %v1196_v3, 7 }
 0x239   : > { %v1480_v13 = vpop.f32.mrb[17].mxu1 }
 0x23a   : > { %v1180_v15 = vmax.f32 %v1130_v11, 0.0  ;;  %v1481_v28 = vadd.f32 %v1480_v13, %v1479_v12  ;;  %v1198_v6 = vsub.s32 0, %v1197_v5 }
 0x23c   : > { %v1655_v16 = vpack.c.bf16 %v1180_v15, %v1179_v14  ;;  %v1482_v17 = vpop.f32.mrb[18].mxu1  ;;  %v1135_v20 = vadd.f32 %v1481_v28, %v991_v25  ;;  %v1199_v8 = vrot.slane %v1194_v7, %v1198_v6 }
 0x23d   : > { %v1483_v18 = vpop.f32.mrb[19].mxu1 }
 0x23e   : > { %v1484_v21 = vadd.f32 %v1483_v18, %v1482_v17  ;;  %1656 = vmatpush3.bf16.msra.mxu0 %v1655_v16  ;;  %v1181_v33 = vmax.f32 %v1135_v20, 0.0 }
 0x23f   : > { %1657 = vmatprep.subr.bf16.mxu0 %v1783_v22 }
 0x240   : > { %v1140_v30 = vadd.f32 %v1484_v21, %v996_v29  ;;  %v1485_v23 = vpop.f32.mrb[20].mxu1 }
 0x241   : > { %v1486_v24 = vpop.f32.mrb[21].mxu1 }
 0x242   : > { %v1182_v26 = vmax.f32 %v1140_v30, 0.0  ;;  %v1487_v59 = vadd.f32 %v1486_v24, %v1485_v23 }
 0x244   : > { %v1658_v32 = vpack.c.bf16 %v1182_v26, %v1181_v33  ;;  %v1488_v34 = vpop.f32.mrb[22].mxu1  ;;  %v1145_v37 = vadd.f32 %v1487_v59, %v1001_v36 }
 0x245   : > { %v1489_v39 = vpop.f32.mrb[23].mxu1 }
 0x246   : > { %v1490_v40 = vadd.f32 %v1489_v39, %v1488_v34  ;;  %1659 = vmatpush3.bf16.msra.mxu0 %v1658_v32  ;;  %v1183_v44 = vmax.f32 %v1145_v37, 0.0 }
 0x247   : > { %1660 = vmatprep.subr.bf16.mxu0 %v1783_v22 }
 0x248   : > { %v1150_v43 = vadd.f32 %v1490_v40, %v1006_v2  ;;  %v1491_v38 = vpop.f32.mrb[24].mxu1 }
 0x249   : > { %v1492_v47 = vpop.f32.mrb[25].mxu1 }
 0x24a   : > { %v1184_v41 = vmax.f32 %v1150_v43, 0.0  ;;  %v1493_v49 = vadd.f32 %v1492_v47, %v1491_v38 }
 0x24c   : > { %v1661_v10 = vpack.c.bf16 %v1184_v41, %v1183_v44  ;;  %v1494_v50 = vpop.f32.mrb[26].mxu1  ;;  %v1155_v52 = vadd.f32 %v1493_v49, %v1011_v42 }
 0x24d   : > { %v1495_v51 = vpop.f32.mrb[27].mxu1 }
 0x24e   : > { %v1496_v45 = vadd.f32 %v1495_v51, %v1494_v50  ;;  %1662 = vmatpush3.bf16.msra.mxu0 %v1661_v10  ;;  %v1185_v56 = vmax.f32 %v1155_v52, 0.0 }
 0x24f   : > { %1663 = vmatprep.subr.bf16.mxu0 %v1783_v22 }
 0x250   : > { %v1160_v19 = vadd.f32 %v1496_v45, %v1016_v53  ;;  %v1497_v54 = vpop.f32.mrb[28].mxu1 }
 0x251   : > { %v1498_v46 = vpop.f32.mrb[29].mxu1 }
 0x252   : > { %v1186_v55 = vmax.f32 %v1160_v19, 0.0  ;;  %v1499_v1 = vadd.f32 %v1498_v46, %v1497_v54 }
 0x254   : > { %v1664_v31 = vpack.c.bf16 %v1186_v55, %v1185_v56  ;;  %v1500_v4 = vpop.f32.mrb[30].mxu1  ;;  %v1165_v48 = vadd.f32 %v1499_v1, %v1021_v27 }
 0x255   : > { %v1501_v35 = vpop.f32.mrb[31].mxu1 }
 0x256   : > { %v1502_v57 = vadd.f32 %v1501_v35, %v1500_v4  ;;  %1665 = vmatpush3.bf16.msra.mxu0 %v1664_v31  ;;  %v1187_v61 = vmax.f32 %v1165_v48, 0.0 }
 0x257   : > { %1666 = vmatprep.subr.bf16.mxu0 %v1783_v22 }
 0x258   : > { %v1170_v60 = vadd.f32 %v1502_v57, %v1026_v58 }
 0x25a   : > { %v1188_v62 = vmax.f32 %v1170_v60, 0.0 }
 0x25c   : > { %v1667_v63 = vpack.c.bf16 %v1188_v62, %v1187_v61 }
 0x25e   : > { %1668 = vmatpush3.bf16.msra.mxu0 %v1667_v63 }
 0x261   : > { %1605 = vmatmul.mubr.f32.vlgmr.msra.gmra.mrb[32].mxu0 %v1189_v0 }
 0x334   : > { %v1266_v22 = vpop.f32.mrb[32].mxu0 }
 0x335   : > { %v1267_v9 = vadd.f32 %v1266_v22, %v1199_v8  ;;  %v1606_v11 = vpop.f32.mrb[33].mxu0 }
 0x337   : > { %1715 = vtanh.f32 %v1267_v9 }
 0x341   : > { %v1716_v12 = vpop.eup %1715 }
 0x342   : > { %1271 = vst [vmem:[%s315_s9] sm:$0x1] %v1716_v12 }
 0x343   : > { %1730 = shalt.err (!%p1727_p5)
}
 0x344   : > { %s1731_s25 = scalar_lea.hbm %s2345_s16, 16  ;;  %s1735_s23 = scalar_lea.hbm %s2395_s7, 64 }
 0x345   : > { %p1732_p7 = scmp.ne.s32.totalorder %s2345_s16, %s1731_s25  ;;  %p1736_p11 = scmp.lt.u32.totalorder %s2345_s16, %s2395_s7 }
 0x346   : > { %p1737_p12 = scmp.lt.u32.totalorder %s1735_s23, %s1731_s25  ;;  %p1739_p0 = scmp.lt.u32.totalorder %s1731_s25, %s2345_s16 }
 0x347   : > { %p1733_p9 = pnand %p1732_p7, %p1868_p6 }
 0x348   : > { %p1738_p13 = por %p1737_p12, %p1736_p11 }
 0x349   : > { %p1734_p10 = pneg %p1733_p9 }
 0x34a   : > { %p1740_p1 = por %p1739_p0, %p1738_p13 }
 0x34c   : > { %p1741_p2 = pnand %p1740_p1, %p1734_p10 }
 0x34e   : > { %1744 = shalt.err (!%p1741_p2)
}
 0x34f   : > { %1669 = dma.vmem_to_hbm [thread:$0]  (%p1868_p6), %s2347_s10, 16, %s2345_s16, %s1273_s17  }
 0x350 PF: > { %p1675_p3 = scmp.ge.s32.totalorder %s1779_s29, 2  ;;  %s1297_s9 = sand.u32 1, %s1767_s26  }
 0x351   : > { %s1298_s14 = scalar_lea.sflag [#allocation5], %s1297_s9 }
 0x352   : > { %p1672_p4 = pnand %p1675_p3, %p1872_p8 }
 0x354   : > { %1762 = dma.done.wait (!%p1672_p4), %s1298_s14, 16  }
 0x355   : > { %1764 = vsyncadd (!%p1672_p4), %s1298_s14, 4294967280  ;;  %p19_p5 = scmp.ge.s32.totalorder %s1853_s8, 6   ;;  %s2398_s26 = smov %s1771_s27 }
 0x356   : > { %s2399_s27 = smov %s1775_s28  ;;  %s2400_s28 = smov %s1866_s11 }
 0x357   : > { %s2401_s29 = smov %s1853_s8  ;;  %21 = sbr.rel (!%p19_p5) target bundleno = 6 (0x6), region = 126 }
 0x35e   :  { %1302 = vsyncpa [#allocation5], 1 }
 0x35f   :  { %1304 = vsyncpa [#allocation5 + $0x1], 1 }

</bundles_post_ra>
